<compile_context>
chip_gen: v7x
topology: tpu7x:2x2x1
jax: 0.10.0
libtpu: 0.0.40
codegen_flags: <defaults>
</compile_context>

<pallas_src>
import functools

import jax
import jax.numpy as jnp
import numpy as np
from jax.experimental import pallas as pl
from jax.experimental.pallas import tpu as pltpu

_LANES = 128


def _collate_metrics_kernel(x_ref, out_ref, *, inv_tr, inv_val):
    """Compute [ |mean(m) - mean(vm)|, mean(m), mean(vm) ].

    x_ref:   VMEM (2, P) f32 — row 0 = train metrics col 0 (zero-padded),
                               row 1 = val   metrics col 0 (zero-padded)
    out_ref: SMEM (3,)   f32 — [diff, tr_mean, te_mean]
    inv_tr / inv_val: trace-time Python float constants (1/n_train, 1/n_val).
    """
    sums = jnp.sum(x_ref[...], axis=1)  # (2,) — one lane reduction per row
    tr = sums[0] * inv_tr
    te = sums[1] * inv_val
    out_ref[0] = jnp.abs(tr - te)
    out_ref[1] = tr
    out_ref[2] = te


def _pad_to(col: jax.Array, p: int) -> jax.Array:
    """(n,) f32 -> (p,) f32, zero-padded."""
    return jnp.pad(col, (0, p - col.shape[0]))


@functools.partial(jax.jit, static_argnames=())
def _collate_metrics_impl(m_col: jax.Array, vm_col: jax.Array):
    n_tr = m_col.shape[0]
    n_val = vm_col.shape[0]
    p = max(_LANES, ((max(n_tr, n_val) + _LANES - 1) // _LANES) * _LANES)

    # Lane-dense (2, P) slab: one DMA, full-width lane reductions in-kernel.
    x = jnp.stack([_pad_to(m_col, p), _pad_to(vm_col, p)], axis=0)

    kernel = functools.partial(
        _collate_metrics_kernel,
        inv_tr=float(1.0 / n_tr),
        inv_val=float(1.0 / n_val),
    )
    out = pl.pallas_call(
        kernel,
        out_shape=jax.ShapeDtypeStruct((3,), jnp.float32),
        in_specs=[pl.BlockSpec(memory_space=pltpu.MemorySpace.VMEM)],
        out_specs=pl.BlockSpec(memory_space=pltpu.MemorySpace.SMEM),
    )(x)
    return out[0], out[1], out[2]


def collate_metrics_pallas(m_array: jax.Array, vm_array: jax.Array):
    """Pallas equivalent of MLPipeline.collate_metrics.

    Accepts (n,) or (n, k) metric buffers; only column 0 is used, matching the
    reference `m_array[:, 0].mean()` semantics.
    Returns (diff, tr_dat, te_dat) as scalar float32 arrays.
    """
    m = jnp.asarray(m_array, dtype=jnp.float32)
    vm = jnp.asarray(vm_array, dtype=jnp.float32)
    if m.ndim == 1:
        m = m[:, None]
    if vm.ndim == 1:
        vm = vm[:, None]
    return _collate_metrics_impl(m[:, 0], vm[:, 0])


class MLPipelineJax:
    """JAX/Pallas port of the MLPipeline base class (abstract pipeline).

    Hyperparameters (epochs, lr) kept for parity; the compute-bearing method
    collate_metrics is backed by the Pallas kernel above.
    """

    def __init__(self, epochs: int = 10, lr: float = 0.025):
        self.epochs = epochs
        self.lr = lr

    # Abstract in the reference module.
    def loss(self, *a, **k):
        raise NotImplementedError

    def forward(self, *a, **k):
        raise NotImplementedError

    def backward(self, *a, **k):
        raise NotImplementedError

    def update(self, *a, **k):
        raise NotImplementedError

    def metrics(self, x, y):
        raise NotImplementedError

    def collate_metrics(self, m_array, vm_array):
        diff, tr_dat, te_dat = collate_metrics_pallas(
            jnp.asarray(m_array), jnp.asarray(vm_array)
        )
        return diff, tr_dat, te_dat


if __name__ == "__main__":
    key = jax.random.PRNGKey(0)
    k1, k2 = jax.random.split(key)

    # Small, deterministic "per-batch metric" buffers, as fit() would build:
    # metrics_array: (nbatch_tr, 1), vmetrics_array: (nbatch_val, 1)
    nbatch_tr, nbatch_val = 8, 6
    m_array = jax.random.uniform(k1, (nbatch_tr, 1), dtype=jnp.float32)
    vm_array = jax.random.uniform(k2, (nbatch_val, 1), dtype=jnp.float32)

    pipe = MLPipelineJax(epochs=10, lr=0.025)
    diff, tr_dat, te_dat = pipe.collate_metrics(m_array, vm_array)
    diff, tr_dat, te_dat = jax.block_until_ready((diff, tr_dat, te_dat))

    # Reference (numpy) semantics from MLPipeline.collate_metrics.
    m_np = np.asarray(m_array)
    vm_np = np.asarray(vm_array)
    tr_ref = m_np[:, 0].mean()
    te_ref = vm_np[:, 0].mean()
    diff_ref = np.abs(tr_ref - te_ref)

    assert np.allclose(float(tr_dat), tr_ref, atol=1e-6), (tr_dat, tr_ref)
    assert np.allclose(float(te_dat), te_ref, atol=1e-6), (te_dat, te_ref)
    assert np.allclose(float(diff), diff_ref, atol=1e-6), (diff, diff_ref)

    print("KERNEL_OK")
</pallas_src>

<mosaic_0001>
module attributes {stable_mosaic.version = 11 : i64} {
  func.func @_collate_metrics_kernel(%arg0: memref<2x128xf32, #tpu.memory_space<vmem>>, %arg1: memref<3xf32, #tpu.memory_space<smem>>) attributes {dimension_semantics = [], scalar_prefetch = 0 : i64, scratch_operands = 0 : i64, tpu.core_type = #tpu.core_type<tc>} {
    %c0 = arith.constant 0 : index
    %c0_0 = arith.constant 0 : index
    %0 = vector.load %arg0[%c0, %c0_0] : memref<2x128xf32, #tpu.memory_space<vmem>>, vector<2x128xf32>
    %cst = arith.constant dense<0.000000e+00> : vector<2xf32>
    %1 = vector.multi_reduction <add>, %0, %cst [1] : vector<2x128xf32> to vector<2xf32>
    %2 = vector.extract_strided_slice %1 {offsets = [0], sizes = [1], strides = [1]} : vector<2xf32> to vector<1xf32>
    %3 = vector.extract %2[0] : f32 from vector<1xf32>
    %cst_1 = arith.constant 1.250000e-01 : f32
    %4 = arith.mulf %3, %cst_1 : f32
    %5 = vector.extract_strided_slice %1 {offsets = [1], sizes = [1], strides = [1]} : vector<2xf32> to vector<1xf32>
    %6 = vector.extract %5[0] : f32 from vector<1xf32>
    %cst_2 = arith.constant 0.166666672 : f32
    %7 = arith.mulf %6, %cst_2 : f32
    %8 = arith.subf %4, %7 : f32
    %9 = math.absf %8 : f32
    %c0_3 = arith.constant 0 : index
    %10 = memref.load %arg1[%c0_3] : memref<3xf32, #tpu.memory_space<smem>>
    memref.store %9, %arg1[%c0_3] : memref<3xf32, #tpu.memory_space<smem>>
    %c1 = arith.constant 1 : index
    %11 = memref.load %arg1[%c1] : memref<3xf32, #tpu.memory_space<smem>>
    memref.store %4, %arg1[%c1] : memref<3xf32, #tpu.memory_space<smem>>
    %c2 = arith.constant 2 : index
    %12 = memref.load %arg1[%c2] : memref<3xf32, #tpu.memory_space<smem>>
    memref.store %7, %arg1[%c2] : memref<3xf32, #tpu.memory_space<smem>>
    return
  }
}

</mosaic_0001>

<bundles_post_ra>
// kernel: _collate_metrics_impl.1
= control target key start
LH: loop header
LB: loop body
LE: loop exit
PB: predicated region body
PF: predicated region fallthrough
CT: control target
= control target key end

     0   :  { %vm10_vm0 = vcmask 1041408   ;;  %s78_s0 = inlined_call_operand.vmem [shape: f32[2,128], index: 0, kind: input, shape index: {}]   ;;  %s79_s1 = inlined_call_operand.vmem [shape: f32[3], index: 1, kind: output, shape index: {}]  }
   0x1   :  { %v9_v0 = vld [vmem:[%s78_s0] sm:$0x3] }
   0x2   :  { %6 = vsyncpa [#allocation3], 0  ;;  %v11_v1 = vsel %vm10_vm0, %v9_v0, 0.0  ;;  %s33_s13 = sshll.u32 %s79_s1, 4  ;;  %s34_s13 = int_to_ptr.vmem [resolvable:$true] %s33_s13 }
   0x3   :  { %12 = vadd.xlane.f32.xlu0 %v11_v1  ;;  %s47_s16 = scalar_lea.vmem %s34_s13, 16  ;;  %p52_p1 = scmp.lt.s32.totalorder %s34_s13, %s34_s13 }
   0x4   :  { %p48_p0 = scmp.ne.s32.totalorder %s34_s13, %s47_s16  ;;  %p53_p2 = scmp.lt.s32.totalorder %s47_s16, %s47_s16 }
   0x6   :  { %p54_p3 = por %p53_p2, %p52_p1 }
   0x8   :  { %p55_p4 = pnand %p54_p3, %p48_p0 }
  0x90   :  { %v13_v2 = vpop.xlane.xlu0 %12 }
  0x91   :  { %v16_v3 = vrot.slane %v13_v2, 1  ;;  %42 = vpush %v13_v2 }
  0x93   :  { %44 = vpush %v16_v3 }
  0xc2   :  { %s43_s8 = spop %42 }
  0xc3   :  { %s15_s9 = smul.f32 0.125, %s43_s8 }
  0xc4   :  { %s45_s10 = spop %44 }
  0xc5   :  { %24 = sst [smem:[#allocation2 + $0x1]] %s15_s9  ;;  %s18_s14 = smul.f32 0.16666667, %s45_s10 }
  0xc7   :  { %s19_s15 = ssub.f32 %s15_s9, %s18_s14 }
  0xc8   :  { %26 = sst [smem:[#allocation2 + $0x2]] %s18_s14 }
  0xc9   :  { %s20_s0 = sand.u32 2147483647, %s19_s15 }
  0xca   :  { %22 = sst [smem:[#allocation2]] %s20_s0 }
  0xcb   :  { %58 = shalt.err (!%p55_p4)
}
  0xcc   :  { %s61_s17 = smov [#allocation2]  }
  0xcd   :  { %36 = dma.smem_to_vmem %s61_s17, 16, %s34_s13, [#allocation3]  }
  0xce   :  { %59 = dma.done.wait [#allocation3], 16  }
  0xcf   :  { %60 = vsyncadd [#allocation3], 4294967280 }
  0xd0   :  { %40 = sfence }
  0xd1   :  { %41 = vsyncpa [#allocation3], 1 }

</bundles_post_ra>
